<compile_context>
chip_gen: v6e
topology: v6e:2x2x1
jax: 0.10.0
libtpu: 0.0.40
codegen_flags: <defaults>
</compile_context>

<pallas_src>
import math
import jax
import jax.numpy as jnp
from jax import lax
from jax.experimental import pallas as pl
from jax.experimental.pallas import tpu as pltpu


# ---------------------------------------------------------------------------
# Fused kernel: one batch element per grid step, all heads packed.
#   x      : (1, L, E) block
#   w_in   : (3, E, E)  (Wq^T, Wk^T, Wv^T)   -- fetched once (constant index)
#   b_in   : (3, 1, E)
#   w_out  : (E, E)     (Wout^T)
#   b_out  : (1, E)
#   out    : (1, L, E) lane-dense attention output (after out-proj)
#   aw     : (1, L, L) head-averaged attention weights
# ---------------------------------------------------------------------------
def _make_fused_attn_kernel(num_heads, head_dim, scale):
    def kernel(x_ref, w_in_ref, b_in_ref, w_out_ref, b_out_ref, o_ref, aw_ref):
        x = x_ref[0]                                          # (L, E)

        # ---- QKV projection (MXU, f32 accumulation) -----------------------
        q = jnp.dot(x, w_in_ref[0],
                    preferred_element_type=jnp.float32) + b_in_ref[0]
        k = jnp.dot(x, w_in_ref[1],
                    preferred_element_type=jnp.float32) + b_in_ref[1]
        v = jnp.dot(x, w_in_ref[2],
                    preferred_element_type=jnp.float32) + b_in_ref[2]
        q = q * scale                                         # PyTorch scaling

        # ---- per-head attention (static unroll over heads) ----------------
        outs = []
        w_acc = None
        for h in range(num_heads):
            lo = h * head_dim
            qh = q[:, lo:lo + head_dim]                       # (L, Dh)
            kh = k[:, lo:lo + head_dim]
            vh = v[:, lo:lo + head_dim]

            # q @ k^T without an explicit transpose: contract the Dh axis.
            s = lax.dot_general(qh, kh, (((1,), (1,)), ((), ())),
                                preferred_element_type=jnp.float32)  # (L, L)
            m = jnp.max(s, axis=-1, keepdims=True)
            e = jnp.exp(s - m)
            denom = jnp.sum(e, axis=-1, keepdims=True)
            p = e * pl.reciprocal(denom, approx=True)         # EUP slot

            outs.append(jnp.dot(p.astype(vh.dtype), vh,
                                preferred_element_type=jnp.float32))  # (L, Dh)
            w_acc = p if w_acc is None else w_acc + p

        ctx = jnp.concatenate(outs, axis=-1)                  # (L, E), f32

        # ---- output projection (fused, lane-dense store) ------------------
        y = jnp.dot(ctx.astype(w_out_ref.dtype), w_out_ref[...],
                    preferred_element_type=jnp.float32) + b_out_ref[...]
        o_ref[0] = y.astype(o_ref.dtype)
        aw_ref[0] = (w_acc * (1.0 / num_heads)).astype(aw_ref.dtype)

    return kernel


def _fused_attention(x, w_in_g, b_in_g, w_out_t, b_out, num_heads, head_dim):
    """x:(B,L,E) -> (output (B,L,E), attn_weights (B,L,L))."""
    B, L, E = x.shape
    scale = 1.0 / math.sqrt(head_dim)
    kernel = _make_fused_attn_kernel(num_heads, head_dim, scale)
    return pl.pallas_call(
        kernel,
        out_shape=(
            jax.ShapeDtypeStruct((B, L, E), x.dtype),
            jax.ShapeDtypeStruct((B, L, L), jnp.float32),
        ),
        grid_spec=pltpu.PrefetchScalarGridSpec(
            num_scalar_prefetch=0,
            grid=(B,),
            in_specs=[
                pl.BlockSpec((1, L, E), lambda b: (b, 0, 0)),    # x
                pl.BlockSpec((3, E, E), lambda b: (0, 0, 0)),    # w_in (const)
                pl.BlockSpec((3, 1, E), lambda b: (0, 0, 0)),    # b_in (const)
                pl.BlockSpec((E, E), lambda b: (0, 0)),          # w_out (const)
                pl.BlockSpec((1, E), lambda b: (0, 0)),          # b_out (const)
            ],
            out_specs=[
                pl.BlockSpec((1, L, E), lambda b: (b, 0, 0)),
                pl.BlockSpec((1, L, L), lambda b: (b, 0, 0)),
            ],
        ),
        compiler_params=pltpu.CompilerParams(
            dimension_semantics=("parallel",)),
    )(x, w_in_g, b_in_g, w_out_t, b_out)


# ---------------------------------------------------------------------------
# Module wrapper: parameters + forward
# ---------------------------------------------------------------------------
class AttentionPallas:
    def __init__(self, hidden_dim, num_heads, key):
        assert hidden_dim % num_heads == 0
        self.hidden_dim = hidden_dim
        self.num_heads = num_heads
        self.head_dim = hidden_dim // num_heads
        E = hidden_dim

        k1, k2 = jax.random.split(key, 2)
        # Deterministic synthetic init (xavier-uniform-ish, zero biases),
        # mirroring nn.MultiheadAttention parameter shapes.
        limit_in = math.sqrt(6.0 / (E + 3 * E))
        self.in_proj_weight = jax.random.uniform(
            k1, (3 * E, E), jnp.float32, -limit_in, limit_in)
        self.in_proj_bias = jnp.zeros((3 * E,), jnp.float32)
        limit_out = math.sqrt(6.0 / (E + E))
        self.out_proj_weight = jax.random.uniform(
            k2, (E, E), jnp.float32, -limit_out, limit_out)
        self.out_proj_bias = jnp.zeros((E,), jnp.float32)

        # One-time layout plumbing for the kernel:
        #   group the in-projection as (3, E, E) = (Wq^T, Wk^T, Wv^T) so the
        #   kernel computes x @ w directly (lane-dense E_out on the RHS).
        w_in_t = self.in_proj_weight.T                                   # (E, 3E)
        self.w_in_g = jnp.transpose(w_in_t.reshape(E, 3, E), (1, 0, 2))  # (3,E,E)
        self.b_in_g = self.in_proj_bias.reshape(3, 1, E)
        self.w_out_t = self.out_proj_weight.T                            # (E, E)
        self.b_out = self.out_proj_bias.reshape(1, E)

    def __call__(self, x):
        """x: (B, L, E) -> (output (B, L, E), attn_weights (B, L, L))."""
        return _fused_attention(x, self.w_in_g, self.b_in_g,
                                self.w_out_t, self.b_out,
                                self.num_heads, self.head_dim)


# ---------------------------------------------------------------------------
# Pure-JAX reference (for correctness check only)
# ---------------------------------------------------------------------------
def _reference(x, model):
    B, L, E = x.shape
    H, Dh = model.num_heads, model.head_dim
    qkv = x @ model.in_proj_weight.T + model.in_proj_bias            # (B, L, 3E)
    q, k, v = jnp.split(qkv, 3, axis=-1)

    def split(t):
        return jnp.transpose(t.reshape(B, L, H, Dh), (0, 2, 1, 3))

    qh, kh, vh = split(q), split(k), split(v)
    s = jnp.einsum('bhqd,bhkd->bhqk', qh, kh) / math.sqrt(Dh)
    p = jax.nn.softmax(s, axis=-1)
    o = jnp.einsum('bhqk,bhkd->bhqd', p, vh)
    o = jnp.transpose(o, (0, 2, 1, 3)).reshape(B, L, E)
    out = o @ model.out_proj_weight.T + model.out_proj_bias
    return out, jnp.mean(p, axis=1)


if __name__ == "__main__":
    B, L, E, H = 2, 8, 32, 4   # batch, seq, hidden_dim, num_heads

    key = jax.random.PRNGKey(0)
    k_param, k_x = jax.random.split(key)
    model = AttentionPallas(hidden_dim=E, num_heads=H, key=k_param)

    x = jax.random.normal(k_x, (B, L, E), jnp.float32)

    output, attn_weights = model(x)
    jax.block_until_ready((output, attn_weights))

    assert output.shape == (B, L, E)
    assert attn_weights.shape == (B, L, L)
    # softmax rows (averaged over heads) still sum to 1
    # (atol loosened because pl.reciprocal(approx=True) is used in-kernel)
    assert jnp.allclose(jnp.sum(attn_weights, axis=-1), 1.0, atol=1e-2)

    # compare against a pure-JAX reference
    out_ref, w_ref = _reference(x, model)
    assert jnp.allclose(output, out_ref, atol=2e-2, rtol=2e-2)
    assert jnp.allclose(attn_weights, w_ref, atol=2e-2, rtol=2e-2)

    print("KERNEL_OK")
</pallas_src>

<mosaic_0001>
module attributes {stable_mosaic.version = 11 : i64} {
  func.func @kernel(%arg0: i32, %arg1: memref<1x8x32xf32, #tpu.memory_space<vmem>>, %arg2: memref<3x32x32xf32, #tpu.memory_space<vmem>>, %arg3: memref<3x1x32xf32, #tpu.memory_space<vmem>>, %arg4: memref<32x32xf32, #tpu.memory_space<vmem>>, %arg5: memref<1x32xf32, #tpu.memory_space<vmem>>, %arg6: memref<1x8x32xf32, #tpu.memory_space<vmem>>, %arg7: memref<1x8x8xf32, #tpu.memory_space<vmem>>) attributes {dimension_semantics = [#tpu.dimension_semantics<parallel>], iteration_bounds = array<i64: 2>, scalar_prefetch = 0 : i64, scratch_operands = 0 : i64, tpu.core_type = #tpu.core_type<tc>, window_params = [{transform_indices = @transform_0, window_bounds = array<i64: 1, 8, 32>}, {pipeline_mode = #tpu.pipeline_mode<synchronous>, transform_indices = @transform_1, window_bounds = array<i64: 3, 32, 32>}, {pipeline_mode = #tpu.pipeline_mode<synchronous>, transform_indices = @transform_2, window_bounds = array<i64: 3, 1, 32>}, {pipeline_mode = #tpu.pipeline_mode<synchronous>, transform_indices = @transform_3, window_bounds = array<i64: 32, 32>}, {pipeline_mode = #tpu.pipeline_mode<synchronous>, transform_indices = @transform_4, window_bounds = array<i64: 1, 32>}, {transform_indices = @transform_5, window_bounds = array<i64: 1, 8, 32>}, {transform_indices = @transform_6, window_bounds = array<i64: 1, 8, 8>}]} {
    %c0 = arith.constant 0 : index
    %c0_0 = arith.constant 0 : index
    %c0_1 = arith.constant 0 : index
    %0 = vector.load %arg1[%c0, %c0_0, %c0_1] : memref<1x8x32xf32, #tpu.memory_space<vmem>>, vector<1x8x32xf32>
    %1 = vector.shape_cast %0 : vector<1x8x32xf32> to vector<8x32xf32>
    %c0_2 = arith.constant 0 : index
    %c0_3 = arith.constant 0 : index
    %c0_4 = arith.constant 0 : index
    %2 = vector.load %arg2[%c0_2, %c0_3, %c0_4] : memref<3x32x32xf32, #tpu.memory_space<vmem>>, vector<1x32x32xf32>
    %3 = vector.shape_cast %2 : vector<1x32x32xf32> to vector<32x32xf32>
    %cst = arith.constant dense<0.000000e+00> : vector<8x32xf32>
    %4 = tpu.matmul %1, %3, %cst {dimension_numbers = #tpu.dot_dimension_numbers<[1], [0], [0], [1], [0, 0, 1, 1], [], []>} : vector<8x32xf32>, vector<32x32xf32>, vector<8x32xf32> -> vector<8x32xf32>
    %c0_5 = arith.constant 0 : index
    %c0_6 = arith.constant 0 : index
    %c0_7 = arith.constant 0 : index
    %5 = vector.load %arg3[%c0_5, %c0_6, %c0_7] : memref<3x1x32xf32, #tpu.memory_space<vmem>>, vector<1x1x32xf32>
    %6 = vector.shape_cast %5 : vector<1x1x32xf32> to vector<1x32xf32>
    %7 = vector.broadcast %6 : vector<1x32xf32> to vector<8x32xf32>
    %8 = arith.addf %4, %7 : vector<8x32xf32>
    %c1 = arith.constant 1 : index
    %c0_8 = arith.constant 0 : index
    %c0_9 = arith.constant 0 : index
    %9 = vector.load %arg2[%c1, %c0_8, %c0_9] : memref<3x32x32xf32, #tpu.memory_space<vmem>>, vector<1x32x32xf32>
    %10 = vector.shape_cast %9 : vector<1x32x32xf32> to vector<32x32xf32>
    %cst_10 = arith.constant dense<0.000000e+00> : vector<8x32xf32>
    %11 = tpu.matmul %1, %10, %cst_10 {dimension_numbers = #tpu.dot_dimension_numbers<[1], [0], [0], [1], [0, 0, 1, 1], [], []>} : vector<8x32xf32>, vector<32x32xf32>, vector<8x32xf32> -> vector<8x32xf32>
    %c1_11 = arith.constant 1 : index
    %c0_12 = arith.constant 0 : index
    %c0_13 = arith.constant 0 : index
    %12 = vector.load %arg3[%c1_11, %c0_12, %c0_13] : memref<3x1x32xf32, #tpu.memory_space<vmem>>, vector<1x1x32xf32>
    %13 = vector.shape_cast %12 : vector<1x1x32xf32> to vector<1x32xf32>
    %14 = vector.broadcast %13 : vector<1x32xf32> to vector<8x32xf32>
    %15 = arith.addf %11, %14 : vector<8x32xf32>
    %c2 = arith.constant 2 : index
    %c0_14 = arith.constant 0 : index
    %c0_15 = arith.constant 0 : index
    %16 = vector.load %arg2[%c2, %c0_14, %c0_15] : memref<3x32x32xf32, #tpu.memory_space<vmem>>, vector<1x32x32xf32>
    %17 = vector.shape_cast %16 : vector<1x32x32xf32> to vector<32x32xf32>
    %cst_16 = arith.constant dense<0.000000e+00> : vector<8x32xf32>
    %18 = tpu.matmul %1, %17, %cst_16 {dimension_numbers = #tpu.dot_dimension_numbers<[1], [0], [0], [1], [0, 0, 1, 1], [], []>} : vector<8x32xf32>, vector<32x32xf32>, vector<8x32xf32> -> vector<8x32xf32>
    %c2_17 = arith.constant 2 : index
    %c0_18 = arith.constant 0 : index
    %c0_19 = arith.constant 0 : index
    %19 = vector.load %arg3[%c2_17, %c0_18, %c0_19] : memref<3x1x32xf32, #tpu.memory_space<vmem>>, vector<1x1x32xf32>
    %20 = vector.shape_cast %19 : vector<1x1x32xf32> to vector<1x32xf32>
    %21 = vector.broadcast %20 : vector<1x32xf32> to vector<8x32xf32>
    %22 = arith.addf %18, %21 : vector<8x32xf32>
    %cst_20 = arith.constant 0.353553385 : f32
    %23 = vector.broadcast %cst_20 : f32 to vector<8x32xf32>
    %24 = arith.mulf %8, %23 : vector<8x32xf32>
    %25 = vector.extract_strided_slice %24 {offsets = [0, 0], sizes = [8, 8], strides = [1, 1]} : vector<8x32xf32> to vector<8x8xf32>
    %26 = vector.extract_strided_slice %15 {offsets = [0, 0], sizes = [8, 8], strides = [1, 1]} : vector<8x32xf32> to vector<8x8xf32>
    %27 = vector.extract_strided_slice %22 {offsets = [0, 0], sizes = [8, 8], strides = [1, 1]} : vector<8x32xf32> to vector<8x8xf32>
    %cst_21 = arith.constant dense<0.000000e+00> : vector<8x8xf32>
    %28 = tpu.matmul %25, %26, %cst_21 {dimension_numbers = #tpu.dot_dimension_numbers<[1], [1], [0], [0], [0, 0, 1, 0], [], []>} : vector<8x8xf32>, vector<8x8xf32>, vector<8x8xf32> -> vector<8x8xf32>
    %cst_22 = arith.constant dense<0xFF800000> : vector<8xf32>
    %29 = vector.multi_reduction <maximumf>, %28, %cst_22 [1] : vector<8x8xf32> to vector<8xf32>
    %30 = vector.shape_cast %29 : vector<8xf32> to vector<8x1xf32>
    %31 = vector.broadcast %30 : vector<8x1xf32> to vector<8x8xf32>
    %32 = arith.subf %28, %31 : vector<8x8xf32>
    %33 = math.exp %32 : vector<8x8xf32>
    %cst_23 = arith.constant dense<0.000000e+00> : vector<8xf32>
    %34 = vector.multi_reduction <add>, %33, %cst_23 [1] : vector<8x8xf32> to vector<8xf32>
    %35 = vector.shape_cast %34 : vector<8xf32> to vector<8x1xf32>
    %36 = tpu.reciprocal %35 {approx = true} : vector<8x1xf32> -> vector<8x1xf32>
    %37 = vector.broadcast %36 : vector<8x1xf32> to vector<8x8xf32>
    %38 = arith.mulf %33, %37 : vector<8x8xf32>
    %cst_24 = arith.constant dense<0.000000e+00> : vector<8x8xf32>
    %39 = tpu.matmul %38, %27, %cst_24 {dimension_numbers = #tpu.dot_dimension_numbers<[1], [0], [0], [1], [0, 0, 1, 1], [], []>} : vector<8x8xf32>, vector<8x8xf32>, vector<8x8xf32> -> vector<8x8xf32>
    %40 = vector.extract_strided_slice %24 {offsets = [0, 8], sizes = [8, 8], strides = [1, 1]} : vector<8x32xf32> to vector<8x8xf32>
    %41 = vector.extract_strided_slice %15 {offsets = [0, 8], sizes = [8, 8], strides = [1, 1]} : vector<8x32xf32> to vector<8x8xf32>
    %42 = vector.extract_strided_slice %22 {offsets = [0, 8], sizes = [8, 8], strides = [1, 1]} : vector<8x32xf32> to vector<8x8xf32>
    %cst_25 = arith.constant dense<0.000000e+00> : vector<8x8xf32>
    %43 = tpu.matmul %40, %41, %cst_25 {dimension_numbers = #tpu.dot_dimension_numbers<[1], [1], [0], [0], [0, 0, 1, 0], [], []>} : vector<8x8xf32>, vector<8x8xf32>, vector<8x8xf32> -> vector<8x8xf32>
    %cst_26 = arith.constant dense<0xFF800000> : vector<8xf32>
    %44 = vector.multi_reduction <maximumf>, %43, %cst_26 [1] : vector<8x8xf32> to vector<8xf32>
    %45 = vector.shape_cast %44 : vector<8xf32> to vector<8x1xf32>
    %46 = vector.broadcast %45 : vector<8x1xf32> to vector<8x8xf32>
    %47 = arith.subf %43, %46 : vector<8x8xf32>
    %48 = math.exp %47 : vector<8x8xf32>
    %cst_27 = arith.constant dense<0.000000e+00> : vector<8xf32>
    %49 = vector.multi_reduction <add>, %48, %cst_27 [1] : vector<8x8xf32> to vector<8xf32>
    %50 = vector.shape_cast %49 : vector<8xf32> to vector<8x1xf32>
    %51 = tpu.reciprocal %50 {approx = true} : vector<8x1xf32> -> vector<8x1xf32>
    %52 = vector.broadcast %51 : vector<8x1xf32> to vector<8x8xf32>
    %53 = arith.mulf %48, %52 : vector<8x8xf32>
    %cst_28 = arith.constant dense<0.000000e+00> : vector<8x8xf32>
    %54 = tpu.matmul %53, %42, %cst_28 {dimension_numbers = #tpu.dot_dimension_numbers<[1], [0], [0], [1], [0, 0, 1, 1], [], []>} : vector<8x8xf32>, vector<8x8xf32>, vector<8x8xf32> -> vector<8x8xf32>
    %55 = arith.addf %38, %53 : vector<8x8xf32>
    %56 = vector.extract_strided_slice %24 {offsets = [0, 16], sizes = [8, 8], strides = [1, 1]} : vector<8x32xf32> to vector<8x8xf32>
    %57 = vector.extract_strided_slice %15 {offsets = [0, 16], sizes = [8, 8], strides = [1, 1]} : vector<8x32xf32> to vector<8x8xf32>
    %58 = vector.extract_strided_slice %22 {offsets = [0, 16], sizes = [8, 8], strides = [1, 1]} : vector<8x32xf32> to vector<8x8xf32>
    %cst_29 = arith.constant dense<0.000000e+00> : vector<8x8xf32>
    %59 = tpu.matmul %56, %57, %cst_29 {dimension_numbers = #tpu.dot_dimension_numbers<[1], [1], [0], [0], [0, 0, 1, 0], [], []>} : vector<8x8xf32>, vector<8x8xf32>, vector<8x8xf32> -> vector<8x8xf32>
    %cst_30 = arith.constant dense<0xFF800000> : vector<8xf32>
    %60 = vector.multi_reduction <maximumf>, %59, %cst_30 [1] : vector<8x8xf32> to vector<8xf32>
    %61 = vector.shape_cast %60 : vector<8xf32> to vector<8x1xf32>
    %62 = vector.broadcast %61 : vector<8x1xf32> to vector<8x8xf32>
    %63 = arith.subf %59, %62 : vector<8x8xf32>
    %64 = math.exp %63 : vector<8x8xf32>
    %cst_31 = arith.constant dense<0.000000e+00> : vector<8xf32>
    %65 = vector.multi_reduction <add>, %64, %cst_31 [1] : vector<8x8xf32> to vector<8xf32>
    %66 = vector.shape_cast %65 : vector<8xf32> to vector<8x1xf32>
    %67 = tpu.reciprocal %66 {approx = true} : vector<8x1xf32> -> vector<8x1xf32>
    %68 = vector.broadcast %67 : vector<8x1xf32> to vector<8x8xf32>
    %69 = arith.mulf %64, %68 : vector<8x8xf32>
    %cst_32 = arith.constant dense<0.000000e+00> : vector<8x8xf32>
    %70 = tpu.matmul %69, %58, %cst_32 {dimension_numbers = #tpu.dot_dimension_numbers<[1], [0], [0], [1], [0, 0, 1, 1], [], []>} : vector<8x8xf32>, vector<8x8xf32>, vector<8x8xf32> -> vector<8x8xf32>
    %71 = arith.addf %55, %69 : vector<8x8xf32>
    %72 = vector.extract_strided_slice %24 {offsets = [0, 24], sizes = [8, 8], strides = [1, 1]} : vector<8x32xf32> to vector<8x8xf32>
    %73 = vector.extract_strided_slice %15 {offsets = [0, 24], sizes = [8, 8], strides = [1, 1]} : vector<8x32xf32> to vector<8x8xf32>
    %74 = vector.extract_strided_slice %22 {offsets = [0, 24], sizes = [8, 8], strides = [1, 1]} : vector<8x32xf32> to vector<8x8xf32>
    %cst_33 = arith.constant dense<0.000000e+00> : vector<8x8xf32>
    %75 = tpu.matmul %72, %73, %cst_33 {dimension_numbers = #tpu.dot_dimension_numbers<[1], [1], [0], [0], [0, 0, 1, 0], [], []>} : vector<8x8xf32>, vector<8x8xf32>, vector<8x8xf32> -> vector<8x8xf32>
    %cst_34 = arith.constant dense<0xFF800000> : vector<8xf32>
    %76 = vector.multi_reduction <maximumf>, %75, %cst_34 [1] : vector<8x8xf32> to vector<8xf32>
    %77 = vector.shape_cast %76 : vector<8xf32> to vector<8x1xf32>
    %78 = vector.broadcast %77 : vector<8x1xf32> to vector<8x8xf32>
    %79 = arith.subf %75, %78 : vector<8x8xf32>
    %80 = math.exp %79 : vector<8x8xf32>
    %cst_35 = arith.constant dense<0.000000e+00> : vector<8xf32>
    %81 = vector.multi_reduction <add>, %80, %cst_35 [1] : vector<8x8xf32> to vector<8xf32>
    %82 = vector.shape_cast %81 : vector<8xf32> to vector<8x1xf32>
    %83 = tpu.reciprocal %82 {approx = true} : vector<8x1xf32> -> vector<8x1xf32>
    %84 = vector.broadcast %83 : vector<8x1xf32> to vector<8x8xf32>
    %85 = arith.mulf %80, %84 : vector<8x8xf32>
    %cst_36 = arith.constant dense<0.000000e+00> : vector<8x8xf32>
    %86 = tpu.matmul %85, %74, %cst_36 {dimension_numbers = #tpu.dot_dimension_numbers<[1], [0], [0], [1], [0, 0, 1, 1], [], []>} : vector<8x8xf32>, vector<8x8xf32>, vector<8x8xf32> -> vector<8x8xf32>
    %87 = arith.addf %71, %85 : vector<8x8xf32>
    %88 = tpu.concatenate %39, %54, %70, %86 in 1 : vector<8x8xf32>, vector<8x8xf32>, vector<8x8xf32>, vector<8x8xf32> -> vector<8x32xf32>
    %c0_37 = arith.constant 0 : index
    %c0_38 = arith.constant 0 : index
    %89 = vector.load %arg4[%c0_37, %c0_38] : memref<32x32xf32, #tpu.memory_space<vmem>>, vector<32x32xf32>
    %cst_39 = arith.constant dense<0.000000e+00> : vector<8x32xf32>
    %90 = tpu.matmul %88, %89, %cst_39 {dimension_numbers = #tpu.dot_dimension_numbers<[1], [0], [0], [1], [0, 0, 1, 1], [], []>} : vector<8x32xf32>, vector<32x32xf32>, vector<8x32xf32> -> vector<8x32xf32>
    %c0_40 = arith.constant 0 : index
    %c0_41 = arith.constant 0 : index
    %91 = vector.load %arg5[%c0_40, %c0_41] : memref<1x32xf32, #tpu.memory_space<vmem>>, vector<1x32xf32>
    %92 = vector.broadcast %91 : vector<1x32xf32> to vector<8x32xf32>
    %93 = arith.addf %90, %92 : vector<8x32xf32>
    %c0_42 = arith.constant 0 : index
    %c0_43 = arith.constant 0 : index
    %c0_44 = arith.constant 0 : index
    %94 = vector.load %arg6[%c0_42, %c0_43, %c0_44] : memref<1x8x32xf32, #tpu.memory_space<vmem>>, vector<1x8x32xf32>
    %95 = vector.shape_cast %94 : vector<1x8x32xf32> to vector<8x32xf32>
    %96 = vector.shape_cast %93 : vector<8x32xf32> to vector<1x8x32xf32>
    tpu.vector_store %arg6[%c0_42, %c0_43, %c0_44], %96 {strides = array<i32>} : memref<1x8x32xf32, #tpu.memory_space<vmem>>, vector<1x8x32xf32>,
    %cst_45 = arith.constant 2.500000e-01 : f32
    %97 = vector.broadcast %cst_45 : f32 to vector<8x8xf32>
    %98 = arith.mulf %87, %97 : vector<8x8xf32>
    %c0_46 = arith.constant 0 : index
    %c0_47 = arith.constant 0 : index
    %c0_48 = arith.constant 0 : index
    %99 = vector.load %arg7[%c0_46, %c0_47, %c0_48] : memref<1x8x8xf32, #tpu.memory_space<vmem>>, vector<1x8x8xf32>
    %100 = vector.shape_cast %99 : vector<1x8x8xf32> to vector<8x8xf32>
    %101 = vector.shape_cast %98 : vector<8x8xf32> to vector<1x8x8xf32>
    tpu.vector_store %arg7[%c0_46, %c0_47, %c0_48], %101 {strides = array<i32>} : memref<1x8x8xf32, #tpu.memory_space<vmem>>, vector<1x8x8xf32>,
    return
  }
  func.func @transform_0(%arg0: i32) -> (i32, i32, i32) {
    %c0_i32 = arith.constant 0 : i32
    %c0_i32_0 = arith.constant 0 : i32
    %c0_i32_1 = arith.constant 0 : i32
    return %arg0, %c0_i32, %c0_i32_0 : i32, i32, i32
  }
  func.func @transform_1(%arg0: i32) -> (i32, i32, i32) {
    %c0_i32 = arith.constant 0 : i32
    %c0_i32_0 = arith.constant 0 : i32
    %c0_i32_1 = arith.constant 0 : i32
    %c0_i32_2 = arith.constant 0 : i32
    return %c0_i32, %c0_i32_0, %c0_i32_1 : i32, i32, i32
  }
  func.func @transform_2(%arg0: i32) -> (i32, i32, i32) {
    %c0_i32 = arith.constant 0 : i32
    %c0_i32_0 = arith.constant 0 : i32
    %c0_i32_1 = arith.constant 0 : i32
    %c0_i32_2 = arith.constant 0 : i32
    return %c0_i32, %c0_i32_0, %c0_i32_1 : i32, i32, i32
  }
  func.func @transform_3(%arg0: i32) -> (i32, i32) {
    %c0_i32 = arith.constant 0 : i32
    %c0_i32_0 = arith.constant 0 : i32
    %c0_i32_1 = arith.constant 0 : i32
    return %c0_i32, %c0_i32_0 : i32, i32
  }
  func.func @transform_4(%arg0: i32) -> (i32, i32) {
    %c0_i32 = arith.constant 0 : i32
    %c0_i32_0 = arith.constant 0 : i32
    %c0_i32_1 = arith.constant 0 : i32
    return %c0_i32, %c0_i32_0 : i32, i32
  }
  func.func @transform_5(%arg0: i32) -> (i32, i32, i32) {
    %c0_i32 = arith.constant 0 : i32
    %c0_i32_0 = arith.constant 0 : i32
    %c0_i32_1 = arith.constant 0 : i32
    return %arg0, %c0_i32, %c0_i32_0 : i32, i32, i32
  }
  func.func @transform_6(%arg0: i32) -> (i32, i32, i32) {
    %c0_i32 = arith.constant 0 : i32
    %c0_i32_0 = arith.constant 0 : i32
    %c0_i32_1 = arith.constant 0 : i32
    return %arg0, %c0_i32, %c0_i32_0 : i32, i32, i32
  }
}

</mosaic_0001>

<bundles_post_ra>
// kernel: tpu_custom_call.1
= control target key start
LH: loop header
LB: loop body
LE: loop exit
PB: predicated region body
PF: predicated region fallthrough
CT: control target
= control target key end

     0   :  { %s2271_s0 = inlined_call_operand.hbm [shape: f32[2,8,32], index: 0, kind: input, shape index: {}]   ;;  %s2272_s1 = inlined_call_operand.hbm [shape: f32[3,32,32], index: 1, kind: input, shape index: {}]   ;;  %s2273_s2 = inlined_call_operand.vmem [shape: f32[3,1,32], index: 2, kind: input, shape index: {}]   ;;  %s2274_s3 = inlined_call_operand.hbm [shape: f32[32,32], index: 3, kind: input, shape index: {}]   ;;  %s2275_s4 = inlined_call_operand.vmem [shape: f32[1,32], index: 4, kind: input, shape index: {}]   ;;  %s2276_s5 = inlined_call_operand.hbm [shape: f32[2,8,32], index: 5, kind: output, shape index: {0}]   ;;  %s2277_s6 = inlined_call_operand.hbm [shape: f32[2,8,8], index: 6, kind: output, shape index: {1}]  }
   0x1   :  { %2282 = sst [smem:[#allocation15_spill]] %s2272_s1 }
   0x2   :  { %12 = vsyncpa [#allocation3], 0 }
   0x3   :  { %14 = vsyncpa [#allocation3 + $0x1], 0 }
   0x4   :  { %15 = vsyncpa [#allocation6], 0 }
   0x5   :  { %16 = vsyncpa [#allocation4], 0 }
   0x6   :  { %18 = vsyncpa [#allocation4 + $0x1], 0 }
   0x7   :  { %19 = vsyncpa [#allocation10], 0 }
   0x8   :  { %21 = vsyncpa [#allocation10 + $0x1], 0  ;;  %s1966_s21 = smov 0   ;;  %s1968_s22 = smov 0  }
   0x9   :  { %s1970_s23 = smov 0   ;;  %s1972_s24 = smov 0  }
   0xa LB: > { %s1987_s25 = sadd.s32 4294967295, %s1914_s24   ;;  %s1477_s26 = sadd.s32 4294967294, %s1914_s24   ;;  %s1914_s24 = sphi %s1972_s24, %s2301_s24   ;;  %s1910_s23 = sphi %s1970_s23, %s2300_s23   ;;  %s1906_s22 = sphi %s1968_s22, %s2299_s22   ;;  %s1902_s21 = sphi %s1966_s21, %s2298_s21  }
   0xb   : > { %p47_p0 = scmp.ne.s32.totalorder %s1906_s22, %s1902_s21  ;;  %p2278_p1 = scmp.eq.s32.totalorder %s1987_s25, 0 }
   0xc   : > { %p161_p3 = scmp.eq.s32.totalorder %s1477_s26, 1  ;;  %p1478_p5 = scmp.ge.s32.totalorder %s1914_s24, 1 }
   0xd   : > { %p1996_p4 = por %p2278_p1, %p47_p0  ;;  %p194_p7 = scmp.lt.s32.totalorder %s1914_s24, 3 }
   0xe   : > { %p2001_p6 = por %p161_p3, %p47_p0  ;;  %s1916_s30 = smov [#allocation5]  }
   0xf   : > { %s2283_s27 = scalar_select %p1996_p4, 1, 0 }
  0x10   : > { %s2284_s28 = scalar_select %p2001_p6, 1, 0 }
  0x11   : > { %p2006_p8 = pnand %p1478_p5, %p194_p7  ;;  %s206_s7 = sshll.u32 %s1916_s30, 4  ;;  %s207_s7 = int_to_ptr.vmem [resolvable:$true] %s206_s7 }
  0x12   : > { %s1917_s9 = smov [#allocation7]   ;;  %s1747_s11 = scalar_lea.vmem %s207_s7, 1536 }
  0x13   : > { %s2285_s29 = scalar_select %p2006_p8, 1, 0 }
  0x14   : > { %p1652_p9 = pneg %p2006_p8  ;;  %s222_s10 = sshll.u32 %s1917_s9, 4  ;;  %s223_s10 = int_to_ptr.vmem [resolvable:$true] %s222_s10 }
  0x15   : > { %p1748_p13 = scmp.ne.s32.totalorder %s207_s7, %s1747_s11  ;;  %p1755_p5 = scmp.lt.s32.totalorder %s207_s7, %s207_s7 }
  0x16   : > { %p2015_p11 = pnand %p1652_p9, %p2278_p1  ;;  %p1756_p7 = scmp.lt.s32.totalorder %s1747_s11, %s1747_s11 }
  0x18   : > { %p1738_p12 = pneg %p2015_p11  ;;  %p1757_p10 = por %p1756_p7, %p1755_p5 }
  0x1a   : > { %p1750_p0 = pnand %p1748_p13, %p1738_p12 }
  0x1c   : > { %p1751_p3 = pneg %p1750_p0 }
  0x1e   : > { %p1758_p9 = pnand %p1757_p10, %p1751_p3 }
  0x20   : > { %1761 = shalt.err (!%p1758_p9)
}
  0x21   : > { %s1918_s12 = smov 128   ;;  %s1919_s13 = smov 8  }
  0x22   : > { %s2287_s1 = sld [smem:[#allocation15_spill]]  ;;  %s1773_s16 = scalar_lea.vmem %s223_s10, 512 }
  0x23   : > { %p1774_p1 = scmp.ne.s32.totalorder %s223_s10, %s1773_s16  ;;  %p1781_p2 = scmp.lt.s32.totalorder %s223_s10, %s223_s10 }
  0x24   : > { %p1782_p6 = scmp.lt.s32.totalorder %s1773_s16, %s1773_s16 }
  0x25   : > { %p1776_p13 = pnand %p1774_p1, %p1738_p12 }
  0x26   : > { %p1783_p5 = por %p1782_p6, %p1781_p2 }
  0x27   : > { %p1777_p0 = pneg %p1776_p13 }
  0x28   : > { %1655 = dma.hbm_to_vmem [thread:$0]  (!%p2015_p11), %s2287_s1, 1536, %s207_s7, [#allocation6], %s1918_s12, %s1918_s12, %s1919_s13  }
  0x29   : > { %p1784_p10 = pnand %p1783_p5, %p1777_p0 }
  0x2b   : > { %1787 = shalt.err (!%p1784_p10)
}
  0x2c   : > { %1658 = dma.hbm_to_vmem [thread:$0]  (!%p2015_p11), %s2274_s3, 512, %s223_s10, [#allocation6], %s1918_s12, %s1918_s12, %s1919_s13  }
  0x2d   : > { %s2038_s19 = sadd.s32 1, %s1914_s24   ;;  %s34_s20 = sadd.s32 1, %s1910_s23 }
  0x2e   : > { %s31_s26 = ssub.s32 %s1914_s24, %s2038_s19  ;;  %p41_p1 = scmp.ne.s32.totalorder %s1910_s23, %s1906_s22 }
  0x2f   : > { %p32_p2 = scmp.eq.s32.totalorder %s31_s26, 0  ;;  %p42_p6 = scmp.eq.s32.totalorder %s1914_s24, 0 }
  0x30   : > { %p2288_p12 = scmp.eq.s32.totalorder %s1987_s25, 1  ;;  %p1672_p7 = scmp.lt.s32.totalorder %s1914_s24, 2 }
  0x31   : > { %s2054_s7 = scalar_select %p32_p2, %s1910_s23, %s34_s20  }
  0x32   : > { %p2048_p3 = por %p2288_p12, %p41_p1  ;;  %p43_p9 = por %p42_p6, %p41_p1 }
  0x33   : > { %s239_s8 = sand.u32 1, %s1910_s23   ;;  %s1483_s10 = sshll.u32 %s1914_s24, 7 }
  0x34   : > { %s2289_s30 = scalar_select %p2048_p3, 1, 0 }
  0x35   : > { %s1482_s9 = sshll.u32 %s239_s8, 3  ;;  %s2061_s13 = scalar_lea.hbm %s2271_s0, %s1483_s10 }
  0x36   : > { %s243_s14 = scalar_lea.vmem [#allocation2], %s1482_s9  ;;  %p2063_p11 = pnand %p1672_p7, %p43_p9 }
  0x37   : > { %s250_s15 = sshll.u32 %s243_s14, 4  ;;  %s240_s17 = scalar_lea.sflag [#allocation3], %s239_s8  ;;  %s251_s15 = int_to_ptr.vmem [resolvable:$true] %s250_s15 }
  0x38   : > { %s1788_s18 = scalar_lea.hbm %s2061_s13, 128  ;;  %p1790_p0 = pneg %p2063_p11 }
  0x39   : > { %p1789_p13 = scmp.ne.s32.totalorder %s2061_s13, %s1788_s18  ;;  %s1793_s10 = scalar_lea.hbm %s2271_s0, 256 }
  0x3a   : > { %p1794_p1 = scmp.lt.s32.totalorder %s2061_s13, %s2271_s0  ;;  %p1795_p2 = scmp.lt.s32.totalorder %s1793_s10, %s1788_s18 }
  0x3b   : > { %p1791_p5 = pnand %p1790_p0, %p1789_p13 }
  0x3c   : > { %p1796_p6 = por %p1795_p2, %p1794_p1 }
  0x3d   : > { %p1792_p10 = pneg %p1791_p5 }
  0x3f   : > { %p1797_p12 = pnand %p1796_p6, %p1792_p10 }
  0x41   : > { %1800 = shalt.err (!%p1797_p12)
}
  0x42   : > { %s1801_s12 = scalar_lea.vmem %s251_s15, 128  ;;  %s1920_s8 = smov [#allocation2]  }
  0x43   : > { %p1802_p7 = scmp.ne.s32.totalorder %s251_s15, %s1801_s12  ;;  %s1806_s14 = sshll.u32 %s1920_s8, 4  ;;  %s1807_s14 = int_to_ptr.vmem [resolvable:$false] %s1806_s14 }
  0x44   : > { %s1808_s1 = scalar_lea.vmem %s1807_s14, 256  ;;  %p1809_p13 = scmp.lt.s32.totalorder %s251_s15, %s1807_s14 }
  0x45   : > { %p1804_p9 = pnand %p1802_p7, %p1790_p0  ;;  %p1810_p5 = scmp.lt.s32.totalorder %s1808_s1, %s1801_s12 }
  0x47   : > { %p1805_p3 = pneg %p1804_p9  ;;  %p1811_p4 = por %p1810_p5, %p1809_p13 }
  0x49   : > { %p1812_p8 = pnand %p1811_p4, %p1805_p3 }
  0x4b   : > { %1815 = shalt.err (!%p1812_p8)
}
  0x4c   : > { %1662 = dma.hbm_to_vmem [thread:$0]  (!%p2063_p11), %s2061_s13, 128, %s251_s15, %s240_s17  }
  0x4d   : > { %p2291_p10 = scmp.ne.s32.totalorder %s2285_s29, 0 }
  0x4e   : > { %s2084_s18 = sand.u32 (!%p2291_p10), 1, %s1906_s22   ;;  %p2292_p4 = scmp.ne.s32.totalorder (!%p2291_p10), %s2283_s27, 0 }
  0x4f   : > { %259 = sbr.rel (%p2291_p10) target bundleno = 1892 (0x764), region = 40  ;;  %s2087_s20 = sshll.u32 (!%p2291_p10), %s2084_s18, 3 }
  0x50   : > { %s262_s1 = scalar_lea.sflag (!%p2291_p10), [#allocation3], %s2084_s18  ;;  %s265_s26 = scalar_lea.vmem (!%p2291_p10), [#allocation2], %s2087_s20 }
  0x54   : > { %1885 = dma.done.wait (%p2292_p4), %s262_s1, 128  }
  0x55   : > { %1887 = vsyncadd (%p2292_p4), %s262_s1, 4294967168  ;;  %p2293_p8 = scmp.eq.s32.totalorder %s1987_s25, 0 }
  0x57   : > { %1889 = dma.done.wait (%p2293_p8), [#allocation6], 2048   ;;  %p2294_p3 = pmov %p2293_p8 }
  0x58   : > { %v1921_v0 = vmov 0.0   ;;  %vm1922_vm0 = vmmov 0   ;;  %v311_v1 = vld [vmem:[#allocation5 + $0x18] sm:$0xff]  ;;  %v310_v3 = vld [vmem:[#allocation5 + $0x10] sm:$0xff]  ;;  %v309_v5 = vld [vmem:[#allocation5 + $0x8] sm:$0xff]  ;;  %vm319_vm1 = vcmask 261120  }
  0x59   : > { %1891 = vsyncadd (%p2294_p3), [#allocation6], 4294965248  ;;  %1554 = vmatprep.subr.mxu0 %v1921_v0  ;;  %1565 = vmatprep.subr.mxu1 %v1921_v0  ;;  %v397_v2 = vld [vmem:[#allocation5 + $0x38] sm:$0xff]  ;;  %v396_v4 = vld [vmem:[#allocation5 + $0x30] sm:$0xff]  ;;  %vm560_vm2 = vcmask 64512   ;;  %s1923_s16 = smov 120  }
  0x5a   : > { %1562 = vmatprep.mubr.msk.f32.mxu0 %vm1922_vm0, %v1921_v0  ;;  %1573 = vmatprep.mubr.msk.f32.mxu1 %vm1922_vm0, %v1921_v0  ;;  %v395_v6 = vld [vmem:[#allocation5 + $0x28] sm:$0xff]  ;;  %v308_v7 = vld [vmem:[#allocation5] sm:$0xff]  ;;  %v307_v9 = vld [vmem:[%s265_s26] sm:$0xff]  ;;  %s1924_s17 = smov 112   ;;  %s1925_s10 = smov 104   ;;  %vm1233_vm3 = vcmask 130048  }
  0x5b   : > { %1555 = vmatpush3.msra.mxu0 %v311_v1  ;;  %1566 = vmatpush3.msra.mxu1 %v397_v2  ;;  %v394_v8 = vld [vmem:[#allocation5 + $0x20] sm:$0xff]  ;;  %v1490_v10 = vld [vmem:[%s2273_s2] ss:$0 sm:$0xff]  ;;  %v1493_v11 = vld [vmem:[%s2273_s2 + $0x1] ss:$0 sm:$0xff]  ;;  %s306_s12 = scalar_lea.vmem [#allocation9], %s2087_s20 }
  0x5c   : > { %1556 = vmatprep.subr.mxu0 %v1921_v0  ;;  %1567 = vmatprep.subr.mxu1 %v1921_v0  ;;  %v480_v19 = vld [vmem:[#allocation5 + $0x58] sm:$0xff]  ;;  %v479_v20 = vld [vmem:[#allocation5 + $0x50] sm:$0xff]  ;;  %v478_v21 = vld [vmem:[#allocation5 + $0x48] sm:$0xff]  ;;  %s1926_s8 = smov 8   ;;  %s1927_s14 = smov 16   ;;  %vm1235_vm4 = vcmask 195584  }
  0x5d   : > { %1557 = vmatpush3.msra.mxu0 %v310_v3  ;;  %1568 = vmatpush3.msra.mxu1 %v396_v4  ;;  %v477_v22 = vld [vmem:[#allocation5 + $0x40] sm:$0xff]  ;;  %v1496_v31 = vld [vmem:[%s2273_s2 + $0x2] ss:$0 sm:$0xff]  ;;  %s1928_s1 = smov 24   ;;  %s1514_s26 = sshll.u32 %s1987_s25, 7 }
  0x5e   : > { %1558 = vmatprep.subr.mxu0 %v1921_v0  ;;  %1569 = vmatprep.subr.mxu1 %v1921_v0  ;;  %s1354_s13 = scalar_lea.hbm %s2277_s6, %s1514_s26  ;;  %s1356_s15 = sshll.u32 %s306_s12, 4  ;;  %s1357_s15 = int_to_ptr.vmem [resolvable:$true] %s1356_s15 }
  0x5f   : > { %1559 = vmatpush3.msra.mxu0 %v309_v5  ;;  %1570 = vmatpush3.msra.mxu1 %v395_v6  ;;  %p2295_p0 = scmp.ne.s32.totalorder %s2289_s30, 0 }
  0x60   : > { %1560 = vmatprep.subr.mxu0 %v1921_v0  ;;  %1571 = vmatprep.subr.mxu1 %v1921_v0 }
  0x61   : > { %1561 = vmatpush3.msra.mxu0 %v308_v7  ;;  %1572 = vmatpush3.msra.mxu1 %v394_v8 }
  0x62   : > { %1563 = vmatmul.mubr.msk.f32.vlgmr.msra.gmra.mxu0 %vm319_vm1, %v307_v9  ;;  %1574 = vmatmul.mubr.msk.f32.vlgmr.msra.gmra.mxu1 %vm319_vm1, %v307_v9 }
  0x63   : > { %1587 = vmatprep.subr.mxu1 %v1921_v0  ;;  %1589 = vmatprep.mubr.msk.f32.mxu1 %vm1922_vm0, %v1921_v0 }
  0x64   : > { %1576 = vmatprep.subr.mxu0 %v1921_v0  ;;  %1584 = vmatprep.mubr.msk.f32.mxu0 %vm1922_vm0, %v1921_v0 }
  0x65   : > { %1577 = vmatpush3.msra.mxu0 %v480_v19 }
  0x66   : > { %1578 = vmatprep.subr.mxu0 %v1921_v0 }
  0x67   : > { %1579 = vmatpush3.msra.mxu0 %v479_v20 }
  0x68   : > { %1580 = vmatprep.subr.mxu0 %v1921_v0 }
  0x69   : > { %1581 = vmatpush3.msra.mxu0 %v478_v21 }
  0x6a   : > { %1582 = vmatprep.subr.mxu0 %v1921_v0 }
  0x6b   : > { %1583 = vmatpush3.msra.mxu0 %v477_v22 }
  0x6c   : > { %1585 = vmatmul.mubr.msk.f32.vlgmr.msra.gmra.mxu0 %vm319_vm1, %v307_v9  ;;  %1607 = vmatprep.subr.mxu0 %v1921_v0 }
  0x6d   : > { %1609 = vmatprep.mubr.msk.f32.mxu0 %vm1922_vm0, %v1921_v0 }
 0x122   : > { %v389_v12 = vpop.f32.mrf.mxu0  ;;  %v472_v13 = vpop.f32.mrf.mxu1 }
 0x123   : > { %v390_v14 = vadd.f32 %v1490_v10, %v389_v12  ;;  %v473_v15 = vadd.f32 %v1493_v11, %v472_v13 }
 0x124   : > { %v1564_v16 = vpop.f32.mrf.mxu0  ;;  %v1575_v17 = vpop.f32.mrf.mxu1 }
 0x125   : > { %v559_v18 = vmul.f32 0.35355338, %v390_v14  ;;  %723 = vrot.lane.b32.xlu1 %v473_v15, %s1923_s16  ;;  %1588 = vmatpush3.xpose.msk.msra.mxu1 %vm560_vm2, %v473_v15 }
 0x126   : > { %1592 = vmatprep.subr.mxu1 %v1921_v0 }
 0x128   : > { %1590 = vmatmul.mubr.msk.f32.vlgmr.msra.gmra.mxu1 %vm560_vm2, %v559_v18 }
 0x129   : > { %721 = vrot.lane.b32.xlu1 %v559_v18, %s1923_s16  ;;  %1594 = vmatprep.mubr.msk.f32.mxu1 %vm1922_vm0, %v1921_v0 }
 0x12c   : > { %v555_v32 = vpop.f32.mrf.mxu0 }
 0x12d   : > { %888 = vrot.lane.b32.xlu1 %v559_v18, %s1924_s17  ;;  %v2147_v33 = vadd.f32 %v1496_v31, %v555_v32 }
 0x12e   : > { %v1586_v34 = vpop.f32.mrf.mxu0 }
 0x12f   : > { %1593 = vmatpush3.msra.mxu1 %v2147_v33 }
 0x130   : > { %1597 = vmatprep.subr.mxu1 %v1921_v0 }
 0x131   : > { %1056 = vrot.lane.b32.xlu1 %v473_v15, %s1925_s10 }
 0x135   : > { %1054 = vrot.lane.b32.xlu1 %v559_v18, %s1925_s10 }
 0x197   : > { %v724_v35 = vpop.permute.xlu1 %723 }
 0x19b   : > { %v722_v36 = vpop.permute.xlu1 %721 }
 0x19f   : > { %v889_v37 = vpop.permute.xlu1 %888 }
 0x1a3   : > { %v1057_v40 = vpop.permute.xlu1 %1056 }
 0x1a7   : > { %v1055_v41 = vpop.permute.xlu1 %1054 }
 0x1e8   : > { %v633_v23 = vpop.f32.mrf.mxu1 }
 0x1e9   : > { %v637_v24 = vsel %vm560_vm2, %v633_v23, -inf }
 0x1ea   : > { %638 = vmax.xlane.f32.xlu0 %v637_v24  ;;  %v1591_v25 = vpop.f32.mrf.mxu1  ;;  %v1239_v24 = vld [vmem:[#allocation7 + $0x10] sm:$0xff] }
 0x1eb   : > { %v1238_v25 = vld [vmem:[#allocation7 + $0x8] sm:$0xff] }
 0x273   : > { %v639_v26 = vpop.xlane.xlu0 %638 }
 0x274   : > { %v640_v27 = vsub.f32 %v633_v23, %v639_v26  ;;  %v1240_v23 = vld [vmem:[#allocation7 + $0x18] sm:$0xff]  ;;  %v1237_v26 = vld [vmem:[#allocation7] sm:$0xff] }
 0x276   : > { %v641_v28 = vmul.f32 1.442695, %v640_v27 }
 0x278   : > { %1720 = vpow2.f32 %v641_v28 }
 0x285   : > { %v1721_v29 = vpop.eup %1720 }
 0x286   : > { %v643_v30 = vsel %vm560_vm2, %v1721_v29, 0.0 }
 0x287   : > { %644 = vadd.xlane.f32.xlu0 %v643_v30 }
 0x29d   : > { %890 = vrot.lane.b32.xlu0 %v473_v15, %s1924_s17 }
 0x310   : > { %v645_v38 = vpop.xlane.xlu0 %644 }
 0x311   : > { %1722 = vrcp.f32 %v645_v38 }
 0x314   : > { %v891_v39 = vpop.permute.xlu0 %890 }
 0x315   : > { %1608 = vmatpush3.xpose.msk.msra.mxu0 %vm560_vm2, %v891_v39 }
 0x316   : > { %1617 = vmatprep.subr.mxu0 %v1921_v0 }
 0x318   : > { %1610 = vmatmul.mubr.msk.f32.vlgmr.msra.gmra.mxu0 %vm560_vm2, %v889_v37 }
 0x319   : > { %1618 = vmatpush3.xpose.msk.msra.mxu0 %vm560_vm2, %v1057_v40  ;;  %1619 = vmatprep.mubr.msk.f32.mxu0 %vm1922_vm0, %v1921_v0 }
 0x31a   : > { %1627 = vmatprep.subr.mxu0 %v1921_v0 }
 0x31c   : > { %1620 = vmatmul.mubr.msk.f32.vlgmr.msra.gmra.mxu0 %vm560_vm2, %v1055_v41 }
 0x31d   : > { %1635 = vmatprep.mubr.msk.f32.mxu0 %vm1922_vm0, %v1921_v0  ;;  %1628 = vmatpush3.msra.mxu0 %v1240_v23 }
 0x31e   : > { %v1723_v42 = vpop.eup %1722  ;;  %1629 = vmatprep.subr.mxu0 %v1921_v0 }
 0x31f   : > { %v647_v43 = vmul.f32 %v1723_v42, %v1721_v29  ;;  %1630 = vmatpush3.msra.mxu0 %v1239_v24 }
 0x320   : > { %1631 = vmatprep.subr.mxu0 %v1921_v0 }
 0x321   : > { %1595 = vmatmul.mubr.msk.f32.vlgmr.msra.gmra.mxu1 %vm560_vm2, %v647_v43  ;;  %1632 = vmatpush3.msra.mxu0 %v1238_v25 }
 0x322   : > { %1598 = vmatpush3.xpose.msk.msra.mxu1 %vm560_vm2, %v724_v35  ;;  %1599 = vmatprep.mubr.msk.f32.mxu1 %vm1922_vm0, %v1921_v0 }
 0x323   : > { %1602 = vmatprep.subr.mxu1 %v1921_v0  ;;  %1633 = vmatprep.subr.mxu0 %v1921_v0 }
 0x324   : > { %1634 = vmatpush3.msra.mxu0 %v1237_v26 }
 0x325   : > { %1600 = vmatmul.mubr.msk.f32.vlgmr.msra.gmra.mxu1 %vm560_vm2, %v722_v36 }
 0x326   : > { %1604 = vmatprep.mubr.msk.f32.mxu1 %vm1922_vm0, %v1921_v0 }
 0x3d8   : > { %v962_v44 = vpop.f32.mrf.mxu0 }
 0x3d9   : > { %v966_v45 = vsel %vm560_vm2, %v962_v44, -inf }
 0x3da   : > { %967 = vmax.xlane.f32.xlu0 %v966_v45  ;;  %v1611_v46 = vpop.f32.mrf.mxu0 }
 0x3dc   : > { %v1128_v47 = vpop.f32.mrf.mxu0 }
 0x3dd   : > { %v1132_v54 = vsel %vm560_vm2, %v1128_v47, -inf }
 0x3de   : > { %v1621_v48 = vpop.f32.mrf.mxu0 }
 0x3e1   : > { %v2171_v49 = vpop.f32.mrf.mxu1 }
 0x3e3   : > { %v1596_v50 = vpop.f32.mrf.mxu1 }
 0x3e5   : > { %v795_v51 = vpop.f32.mrf.mxu1 }
 0x3e6   : > { %v799_v52 = vsel %vm560_vm2, %v795_v51, -inf }
 0x3e7   : > { %800 = vmax.xlane.f32.xlu1 %v799_v52  ;;  %v1601_v53 = vpop.f32.mrf.mxu1 }
 0x3eb   : > { %1133 = vmax.xlane.f32.xlu1 %v1132_v54 }
 0x463   : > { %v968_v55 = vpop.xlane.xlu0 %967 }
 0x464   : > { %v969_v56 = vsub.f32 %v962_v44, %v968_v55 }
 0x466   : > { %v970_v57 = vmul.f32 1.442695, %v969_v56 }
 0x468   : > { %1724 = vpow2.f32 %v970_v57 }
 0x470   : > { %v801_v58 = vpop.xlane.xlu1 %800 }
 0x471   : > { %v802_v3 = vsub.f32 %v795_v51, %v801_v58 }
 0x473   : > { %v803_v4 = vmul.f32 1.442695, %v802_v3 }
 0x474   : > { %v1134_v59 = vpop.xlane.xlu1 %1133 }
 0x475   : > { %v1725_v60 = vpop.eup %1724  ;;  %v1135_v61 = vsub.f32 %v1128_v47, %v1134_v59 }
 0x476   : > { %v972_v62 = vsel %vm560_vm2, %v1725_v60, 0.0 }
 0x477   : > { %v1136_v63 = vmul.f32 1.442695, %v1135_v61  ;;  %973 = vadd.xlane.f32.xlu0 %v972_v62 }
 0x479   : > { %1726 = vpow2.f32 %v1136_v63 }
 0x47a   : > { %1728 = vpow2.f32 %v803_v4 }
 0x486   : > { %v1727_v1 = vpop.eup %1726 }
 0x487   : > { %v1138_v2 = vsel %vm560_vm2, %v1727_v1, 0.0  ;;  %v1729_v5 = vpop.eup %1728 }
 0x488   : > { %1139 = vadd.xlane.f32.xlu1 %v1138_v2  ;;  %v805_v6 = vsel %vm560_vm2, %v1729_v5, 0.0 }
 0x48d   : > { %811 = vrot.lane.b32.xlu0 %v2147_v33, %s1923_s16  ;;  %s1330_s16 = scalar_lea.sflag [#allocation10], %s2084_s18 }
 0x499   : > { %977 = vrot.lane.b32.xlu1 %v2147_v33, %s1924_s17  ;;  %s1816_s17 = scalar_lea.vmem %s1357_s15, 128 }
 0x49a   : > { %p1817_p11 = scmp.ne.s32.totalorder %s1357_s15, %s1816_s17 }
 0x49c   : > { %p1818_p1 = pnand %p1817_p11, %p2295_p0 }
 0x49e   : > { %p1819_p2 = pneg %p1818_p1 }
 0x4bd   : > { %806 = vadd.xlane.f32.xlu1 %v805_v6 }
 0x4ce   : > { %1143 = vrot.lane.b32.xlu1 %v2147_v33, %s1925_s10  ;;  %s1929_s10 = smov [#allocation9]  }
 0x4cf   : > { %s1820_s11 = sshll.u32 %s1929_s10, 4  ;;  %s1821_s11 = int_to_ptr.vmem [resolvable:$false] %s1820_s11 }
 0x4d0   : > { %s1822_s9 = scalar_lea.vmem %s1821_s11, 256  ;;  %p1823_p6 = scmp.lt.s32.totalorder %s1357_s15, %s1821_s11 }
 0x4d1   : > { %p1824_p12 = scmp.lt.s32.totalorder %s1822_s9, %s1816_s17 }
 0x4d3   : > { %p1825_p7 = por %p1824_p12, %p1823_p6 }
 0x4d5   : > { %p1826_p9 = pnand %p1825_p7, %p1819_p2 }
 0x500   : > { %v974_v7 = vpop.xlane.xlu0 %973 }
 0x501   : > { %1730 = vrcp.f32 %v974_v7 }
 0x504   : > { %v812_v8 = vpop.permute.xlu0 %811 }
 0x505   : > { %1603 = vmatpush3.msra.mxu1 %v812_v8 }
 0x506   : > { %1612 = vmatprep.subr.mxu1 %v1921_v0 }
 0x50e   : > { %v1731_v12 = vpop.eup %1730 }
 0x50f   : > { %v976_v17 = vmul.f32 %v1731_v12, %v1725_v60 }
 0x511   : > { %v1140_v9 = vpop.xlane.xlu1 %1139 }
 0x515   : > { %v978_v10 = vpop.permute.xlu1 %977 }
 0x546   : > { %v807_v11 = vpop.xlane.xlu1 %806 }
 0x547   : > { %1732 = vrcp.f32 %v807_v11 }
 0x548   : > { %1734 = vrcp.f32 %v1140_v9 }
 0x54a   : > { %v1144_v20 = vpop.permute.xlu1 %1143 }
 0x554   : > { %v1733_v13 = vpop.eup %1732 }
 0x555   : > { %v809_v14 = vmul.f32 %v1733_v13, %v1729_v5  ;;  %v1735_v15 = vpop.eup %1734 }
 0x556   : > { %v1142_v19 = vmul.f32 %v1735_v15, %v1727_v1 }
 0x557   : > { %1605 = vmatmul.mubr.msk.f32.vlgmr.msra.gmra.mxu1 %vm560_vm2, %v809_v14  ;;  %v887_v16 = vadd.f32 %v809_v14, %v647_v43 }
 0x558   : > { %1613 = vmatpush3.msra.mxu1 %v978_v10  ;;  %1614 = vmatprep.mubr.msk.f32.mxu1 %vm1922_vm0, %v1921_v0 }
 0x559   : > { %1622 = vmatprep.subr.mxu1 %v1921_v0  ;;  %v1053_v18 = vadd.f32 %v976_v17, %v887_v16 }
 0x55b   : > { %1615 = vmatmul.mubr.msk.f32.vlgmr.msra.gmra.mxu1 %vm560_vm2, %v976_v17  ;;  %v1219_v21 = vadd.f32 %v1142_v19, %v1053_v18 }
 0x55c   : > { %1623 = vmatpush3.msra.mxu1 %v1144_v20  ;;  %1624 = vmatprep.mubr.msk.f32.mxu1 %vm1922_vm0, %v1921_v0 }
 0x55d   : > { %v1322_v22 = vmul.f32 0.25, %v1219_v21 }
 0x55f   : > { %1625 = vmatmul.mubr.msk.f32.vlgmr.msra.gmra.mxu1 %vm560_vm2, %v1142_v19  ;;  %1323 = vst.msk [vmem:[%s306_s12] sm:$0xff] %vm560_vm2, %v1322_v22 }
 0x617   : > { %v883_v27 = vpop.f32.mrf.mxu1 }
 0x618   : > { %1221 = vrot.lane.b32.xlu0 %v883_v27, %s1926_s8 }
 0x619   : > { %v1606_v28 = vpop.f32.mrf.mxu1 }
 0x61b   : > { %v1049_v29 = vpop.f32.mrf.mxu1 }
 0x61c   : > { %1225 = vrot.lane.b32.xlu1 %v1049_v29, %s1927_s14 }
 0x61d   : > { %v1616_v30 = vpop.f32.mrf.mxu1 }
 0x61f   : > { %v1215_v31 = vpop.f32.mrf.mxu1 }
 0x620   : > { %1229 = vrot.lane.b32.xlu0 %v1215_v31, %s1928_s1 }
 0x621   : > { %v1626_v32 = vpop.f32.mrf.mxu1 }
 0x68a   : > { %v1222_v33 = vpop.permute.xlu0 %1221 }
 0x68b   : > { %v1232_v34 = vsel %vm560_vm2, %v2171_v49, %v1222_v33 }
 0x68e   : > { %v1226_v0 = vpop.permute.xlu1 %1225 }
 0x68f   : > { %v1234_v35 = vsel %vm1233_vm3, %v1232_v34, %v1226_v0 }
 0x692   : > { %v1230_v36 = vpop.permute.xlu0 %1229 }
 0x693   : > { %v1236_v37 = vsel %vm1235_vm4, %v1234_v35, %v1230_v36 }
 0x694   : > { %1636 = vmatmul.mubr.msk.f32.vlgmr.msra.gmra.mxu0 %vm319_vm1, %v1236_v37 }
 0x695   : > { %1829 = shalt.err (!%p1826_p9)
}
 0x696   : > { %s1830_s8 = scalar_lea.hbm %s1354_s13, 128  ;;  %s1834_s1 = scalar_lea.hbm %s2277_s6, 256 }
 0x697   : > { %p1831_p13 = scmp.ne.s32.totalorder %s1354_s13, %s1830_s8  ;;  %p1835_p4 = scmp.lt.s32.totalorder %s1354_s13, %s2277_s6 }
 0x698   : > { %p1836_p8 = scmp.lt.s32.totalorder %s1834_s1, %s1830_s8 }
 0x699   : > { %p1832_p5 = pnand %p1831_p13, %p2295_p0 }
 0x69a   : > { %p1837_p3 = por %p1836_p8, %p1835_p4 }
 0x69b   : > { %p1833_p10 = pneg %p1832_p5 }
 0x69d   : > { %p1838_p11 = pnand %p1837_p3, %p1833_p10 }
 0x69f   : > { %1841 = shalt.err (!%p1838_p11)
}
 0x6a0   : > { %1649 = dma.vmem_to_hbm [thread:$0]  (%p2295_p0), %s1357_s15, 128, %s1354_s13, %s1330_s16   ;;  %v1510_v38 = vld [vmem:[%s2275_s4] ss:$0 sm:$0xff] }
 0x6a1   : > { %s299_s11 = scalar_lea.vmem [#allocation8], %s2087_s20  ;;  %s2233_s14 = scalar_lea.hbm %s2276_s5, %s1514_s26 }
 0x6a2   : > { %s1343_s9 = sshll.u32 %s299_s11, 4  ;;  %s1325_s1 = scalar_lea.sflag [#allocation4], %s2084_s18  ;;  %s1344_s9 = int_to_ptr.vmem [resolvable:$true] %s1343_s9 }
 0x6a3   : > { %s1842_s13 = scalar_lea.vmem %s1344_s9, 128  ;;  %s1930_s20 = smov [#allocation8]  }
 0x6a4   : > { %p1843_p1 = scmp.ne.s32.totalorder %s1344_s9, %s1842_s13  ;;  %s1846_s15 = sshll.u32 %s1930_s20, 4  ;;  %s1847_s15 = int_to_ptr.vmem [resolvable:$false] %s1846_s15 }
 0x6a5   : > { %s1848_s16 = scalar_lea.vmem %s1847_s15, 256  ;;  %p1849_p12 = scmp.lt.s32.totalorder %s1344_s9, %s1847_s15 }
 0x6a6   : > { %p1844_p2 = pnand %p1843_p1, %p2295_p0  ;;  %p1850_p7 = scmp.lt.s32.totalorder %s1848_s16, %s1842_s13 }
 0x6a8   : > { %p1845_p6 = pneg %p1844_p2  ;;  %p1851_p9 = por %p1850_p7, %p1849_p12 }
 0x6aa   : > { %p1852_p13 = pnand %p1851_p9, %p1845_p6 }
 0x754   : > { %v1317_v39 = vpop.f32.mrf.mxu0 }
 0x755   : > { %v1318_v40 = vadd.f32 %v1510_v38, %v1317_v39 }
 0x756   : > { %v1637_v41 = vpop.f32.mrf.mxu0 }
 0x757   : > { %1321 = vst.msk [vmem:[%s299_s11] sm:$0xff] %vm319_vm1, %v1318_v40 }
 0x758   : > { %1855 = shalt.err (!%p1852_p13)
}
 0x759   : > { %s1856_s25 = scalar_lea.hbm %s2233_s14, 128  ;;  %s1860_s27 = scalar_lea.hbm %s2276_s5, 256 }
 0x75a   : > { %p1857_p5 = scmp.ne.s32.totalorder %s2233_s14, %s1856_s25  ;;  %p1861_p8 = scmp.lt.s32.totalorder %s2233_s14, %s2276_s5 }
 0x75b   : > { %p1862_p3 = scmp.lt.s32.totalorder %s1860_s27, %s1856_s25 }
 0x75c   : > { %p1858_p10 = pnand %p1857_p5, %p2295_p0 }
 0x75d   : > { %p1863_p11 = por %p1862_p3, %p1861_p8 }
 0x75e   : > { %p1859_p4 = pneg %p1858_p10 }
 0x760   : > { %p1864_p1 = pnand %p1863_p11, %p1859_p4 }
 0x762   : > { %1867 = shalt.err (!%p1864_p1)
}
 0x763   : > { %1648 = dma.vmem_to_hbm [thread:$0]  (%p2295_p0), %s1344_s9, 128, %s2233_s14, %s1325_s1  }
 0x764 PF: > { %s1368_s10 = sand.u32 1, %s1902_s21   ;;  %p2296_p2 = scmp.ne.s32.totalorder %s2284_s28, 0 }
 0x765   : > { %p2297_p6 = scmp.ge.s32.totalorder %s1914_s24, 2  ;;  %s1369_s11 = scalar_lea.sflag [#allocation4], %s1368_s10 }
 0x767   : > { %p1664_p12 = pnand %p2297_p6, %p2296_p2 }
 0x769   : > { %p1665_p7 = pneg %p1664_p12 }
 0x76b   : > { %1893 = dma.done.wait (%p1665_p7), %s1369_s11, 128  }
 0x76c   : > { %1895 = vsyncadd (%p1665_p7), %s1369_s11, 4294967168  ;;  %s1378_s8 = scalar_lea.sflag [#allocation10], %s1368_s10 }
 0x76d   : > { %1897 = dma.done.wait (%p1665_p7), %s1378_s8, 128  }
 0x76e   : > { %1899 = vsyncadd (%p1665_p7), %s1378_s8, 4294967168  ;;  %p24_p0 = scmp.ge.s32.totalorder %s2038_s19, 4   ;;  %s2298_s21 = smov %s1906_s22 }
 0x76f   : > { %s2299_s22 = smov %s1910_s23  ;;  %s2300_s23 = smov %s2054_s7 }
 0x770   : > { %s2301_s24 = smov %s2038_s19  ;;  %26 = sbr.rel (!%p24_p0) target bundleno = 10 (0xa), region = 114 }
 0x775   :  { %1383 = vsyncpa [#allocation3], 1 }
 0x776   :  { %1385 = vsyncpa [#allocation3 + $0x1], 1 }
 0x777   :  { %1386 = vsyncpa [#allocation6], 1 }
 0x778   :  { %1387 = vsyncpa [#allocation4], 1 }
 0x779   :  { %1389 = vsyncpa [#allocation4 + $0x1], 1 }
 0x77a   :  { %1390 = vsyncpa [#allocation10], 1 }
 0x77b   :  { %1392 = vsyncpa [#allocation10 + $0x1], 1 }

</bundles_post_ra>
